<compile_context>
chip_gen: v5e
topology: v5e:2x2
jax: 0.10.0
libtpu: 0.0.40
codegen_flags: <defaults>
</compile_context>

<pallas_src>
import jax
import jax.numpy as jnp
from jax.experimental import pallas as pl
from jax.experimental.pallas import tpu as pltpu


ROW_PAD = 128          # every table padded to 128 rows -> fully (8,128)-aligned one-hots
BIAS_ROW = ROW_PAD - 1  # always-selected row of the concatenated user table = folded bias
NUM_USER_FEATURES = 6


def mf_kernel(idx_ref, user_t_ref, item_t_ref, out_ref):
    """One batch tile.

    idx_ref    : [8, TB]        int32  rows 0..5 = offset user-feature ids,
                                       row 6 = destination id, row 7 = zero pad
    user_t_ref : [F, ROW_PAD]   bf16   concatenated folded user tables (+ bias at BIAS_ROW)
    item_t_ref : [F, ROW_PAD]   bf16   transposed, zero-padded item table
    out_ref    : [1, TB]        f32    diag(U @ I^T) for this tile (lane-dense)
    """
    tb = out_ref.shape[1]

    # Hoisted once per tile and reused by all hot-mask builds (JAX does not CSE
    # broadcast_in_dim, so rebuilding it per gather would be 7x the VALU work).
    rows = jax.lax.broadcasted_iota(jnp.int32, (ROW_PAD, tb), 0)

    idx = idx_ref[...]                                    # [8, TB] int32

    # Single multi-hot for all six user features plus the constant bias row.
    # Feature ranges are disjoint by construction, so OR == exact multi-hot.
    mh = rows == BIAS_ROW
    for f in range(NUM_USER_FEATURES):
        mh = mh | (rows == idx[f:f + 1, :])
    mh = mh.astype(user_t_ref.dtype)                      # bool -> bf16 directly

    oh_item = (rows == idx[NUM_USER_FEATURES:NUM_USER_FEATURES + 1, :]
               ).astype(item_t_ref.dtype)                 # [ROW_PAD, TB]

    # Exact "gathers" on the MXU, f32 accumulation.
    user_t = jnp.dot(user_t_ref[...], mh,
                     preferred_element_type=jnp.float32)  # [F, TB]
    item_t = jnp.dot(item_t_ref[...], oh_item,
                     preferred_element_type=jnp.float32)  # [F, TB]

    # Row-wise dot(U, I) == diag(U @ I^T); sublane reduce -> lane-dense output row.
    out_ref[...] = jnp.sum(user_t * item_t, axis=0, keepdims=True)


def matrix_factorization_forward(idx_stack, user_table_t, item_table_t, *, block_b=4096):
    """idx_stack:    [8, B] int32 (rows 0..5 already offset into the concatenated user
                     table, row 6 = destination, row 7 = padding zeros)
       user_table_t: [num_factor, ROW_PAD]  bf16 folded+concatenated user table (+ bias row)
       item_table_t: [num_factor, ROW_PAD]  bf16 transposed item table
       block_b:      batch tile (lane axis), power of 2; clamped so the grid keeps
                     >= 2 steps when B allows (v7x 2-TC sharding of the parallel axis).
    """
    B = int(idx_stack.shape[1])
    nf = int(user_table_t.shape[0])

    eff_bb = min(int(block_b), max(128, pl.next_power_of_2(pl.cdiv(B, 2))))
    num_blocks = pl.cdiv(B, eff_bb)
    b_pad = num_blocks * eff_bb

    # Pad the ragged tail with index 0 (always a valid row); padded outputs sliced off.
    idx_p = jnp.pad(idx_stack.astype(jnp.int32), ((0, 0), (0, b_pad - B)))

    idx_spec = pl.BlockSpec((8, eff_bb), lambda i: (0, i))
    table_spec = pl.BlockSpec((nf, ROW_PAD), lambda i: (0, 0))   # grid-invariant
    out_spec = pl.BlockSpec((1, eff_bb), lambda i: (0, i))

    flops = b_pad * (2 * 2 * nf * ROW_PAD + 3 * nf)
    bytes_accessed = (8 * b_pad * 4 + b_pad * 4
                      + 2 * nf * ROW_PAD * user_table_t.dtype.itemsize)

    out = pl.pallas_call(
        mf_kernel,
        out_shape=jax.ShapeDtypeStruct((1, b_pad), jnp.float32),
        grid=(num_blocks,),
        in_specs=[idx_spec, table_spec, table_spec],
        out_specs=out_spec,
        compiler_params=pltpu.CompilerParams(dimension_semantics=("parallel",)),
        cost_estimate=pl.CostEstimate(flops=flops, transcendentals=0,
                                      bytes_accessed=bytes_accessed),
    )(idx_p, user_table_t, item_table_t)
    return out[0, :B]   # matches output.view(-1)


class MatrixFactorizationParams:
    def __init__(self, key, num_dayofweek, num_time, num_sex, num_age,
                 num_month, num_day, num_destination, num_dim=8, num_factor=48,
                 table_dtype=jnp.bfloat16, block_b=4096):
        user_vocabs = [num_dayofweek, num_time, num_sex, num_age, num_month, num_day]
        self.offsets, acc = [], 0
        for v in user_vocabs:
            self.offsets.append(acc)
            acc += v
        total_vocab = acc
        # TODO(synk): vocabularies that overflow 128 rows would need a row-blocked
        #             multi-hot or a DMA gather; not needed at this module's sizes.
        assert total_vocab <= BIAS_ROW, "concatenated user vocab must fit below the bias row"
        assert num_destination <= ROW_PAD, "item vocab must fit in 128 rows"

        ks = jax.random.split(key, 9)
        self.num_dim, self.num_factor, self.block_b = num_dim, num_factor, block_b

        # --- original (un-folded) parameters, kept for reference checks ---
        self.emb_dayofweek = jax.random.normal(ks[0], (num_dayofweek, num_dim), jnp.float32)
        self.emb_time      = jax.random.normal(ks[1], (num_time, num_dim), jnp.float32)
        self.emb_sex       = jax.random.normal(ks[2], (num_sex, num_dim), jnp.float32)
        self.emb_age       = jax.random.normal(ks[3], (num_age, num_dim), jnp.float32)
        self.emb_month     = jax.random.normal(ks[4], (num_month, num_dim), jnp.float32)
        self.emb_day       = jax.random.normal(ks[5], (num_day, num_dim), jnp.float32)
        fan_in = 6 * num_dim
        bound = 1.0 / (fan_in ** 0.5)
        self.w_proj = jax.random.uniform(ks[6], (fan_in, num_factor), jnp.float32, -bound, bound)
        self.b_proj = jax.random.uniform(ks[7], (num_factor,), jnp.float32, -bound, bound)
        self.item_table = jax.random.normal(ks[8], (num_destination, num_factor), jnp.float32)

        # --- fold the Linear into per-feature tables, concatenate them along the vocab
        #     axis, fold the bias in as an always-selected row, transpose + zero-pad ---
        embs = [self.emb_dayofweek, self.emb_time, self.emb_sex,
                self.emb_age, self.emb_month, self.emb_day]
        projs = []
        for f, emb in enumerate(embs):
            w_f = self.w_proj[f * num_dim:(f + 1) * num_dim, :]                 # [num_dim, F]
            projs.append(jnp.dot(emb, w_f, precision=jax.lax.Precision.HIGHEST))  # [n_f, F]
        user_cat = jnp.concatenate(projs, axis=0)                               # [total, F]

        user_t = jnp.zeros((num_factor, ROW_PAD), jnp.float32)
        user_t = user_t.at[:, :total_vocab].set(user_cat.T)
        user_t = user_t.at[:, BIAS_ROW].set(self.b_proj)                        # folded bias
        self.kt_user = user_t.astype(table_dtype)

        item_t = jnp.zeros((num_factor, ROW_PAD), jnp.float32)
        item_t = item_t.at[:, :num_destination].set(self.item_table.T)
        self.kt_item = item_t.astype(table_dtype)

    def _stack_indices(self, dayofweek, time, sex, age, month, day, destination):
        user_idx = [dayofweek, time, sex, age, month, day]
        rows = [jnp.asarray(ix, jnp.int32) + off for ix, off in zip(user_idx, self.offsets)]
        rows.append(jnp.asarray(destination, jnp.int32))
        rows.append(jnp.zeros_like(rows[0]))            # pad to 8 sublanes
        return jnp.stack(rows, axis=0)                  # [8, B]

    def forward(self, dayofweek, time, sex, age, month, day, destination):
        idx_stack = self._stack_indices(dayofweek, time, sex, age, month, day, destination)
        return matrix_factorization_forward(idx_stack, self.kt_user, self.kt_item,
                                             block_b=self.block_b)


if __name__ == "__main__":
    key = jax.random.PRNGKey(0)
    pkey, ikey = jax.random.split(key)

    num_dayofweek, num_time, num_sex, num_age = 7, 24, 2, 10
    num_month, num_day, num_destination = 12, 31, 100
    num_dim, num_factor = 8, 48
    B = 8

    params = MatrixFactorizationParams(
        pkey, num_dayofweek, num_time, num_sex, num_age,
        num_month, num_day, num_destination, num_dim, num_factor)

    iks = jax.random.split(ikey, 7)
    dayofweek   = jax.random.randint(iks[0], (B,), 0, num_dayofweek)
    time        = jax.random.randint(iks[1], (B,), 0, num_time)
    sex         = jax.random.randint(iks[2], (B,), 0, num_sex)
    age         = jax.random.randint(iks[3], (B,), 0, num_age)
    month       = jax.random.randint(iks[4], (B,), 0, num_month)
    day         = jax.random.randint(iks[5], (B,), 0, num_day)
    destination = jax.random.randint(iks[6], (B,), 0, num_destination)

    out = params.forward(dayofweek, time, sex, age, month, day, destination)
    jax.block_until_ready(out)
    assert out.shape == (B,)

    # (1) Tight check: plain-JAX recomputation from the SAME folded bf16 tables.
    #     The in-kernel multi-hot selection is exact; only f32 summation order differs.
    user_tf = params.kt_user.astype(jnp.float32)
    item_tf = params.kt_item.astype(jnp.float32)
    user_idx = [dayofweek, time, sex, age, month, day]
    u_t = user_tf[:, BIAS_ROW][:, None] + sum(
        user_tf[:, off + jnp.asarray(ix, jnp.int32)]
        for off, ix in zip(params.offsets, user_idx))
    i_t = item_tf[:, destination]
    tight_ref = jnp.sum(u_t * i_t, axis=0)
    assert jnp.allclose(out, tight_ref, atol=1e-4, rtol=1e-4)

    # (2) Loose check vs the original f32 formulation diag((concat @ W + b) @ I^T):
    #     only deviation is the deliberate bf16 storage of the folded tables/bias.
    x_ref = jnp.concatenate(
        [params.emb_dayofweek[dayofweek], params.emb_time[time], params.emb_sex[sex],
         params.emb_age[age], params.emb_month[month], params.emb_day[day]], axis=-1)
    u_ref = jnp.dot(x_ref, params.w_proj, precision=jax.lax.Precision.HIGHEST) + params.b_proj
    i_ref = params.item_table[destination]
    loose_ref = jnp.sum(u_ref * i_ref, axis=-1)
    assert jnp.allclose(out, loose_ref, atol=1e-1, rtol=5e-2)

    print("KERNEL_OK")
</pallas_src>

<mosaic_0001>
module attributes {stable_mosaic.version = 11 : i64} {
  func.func @mf_kernel(%arg0: i32, %arg1: memref<8x128xi32, #tpu.memory_space<vmem>>, %arg2: memref<48x128xbf16, #tpu.memory_space<vmem>>, %arg3: memref<48x128xbf16, #tpu.memory_space<vmem>>, %arg4: memref<1x128xf32, #tpu.memory_space<vmem>>) attributes {dimension_semantics = [#tpu.dimension_semantics<parallel>], iteration_bounds = array<i64: 1>, scalar_prefetch = 0 : i64, scratch_operands = 0 : i64, tpu.core_type = #tpu.core_type<tc>, window_params = [{transform_indices = @transform_0, window_bounds = array<i64: 8, 128>}, {pipeline_mode = #tpu.pipeline_mode<synchronous>, transform_indices = @transform_1, window_bounds = array<i64: 48, 128>}, {pipeline_mode = #tpu.pipeline_mode<synchronous>, transform_indices = @transform_2, window_bounds = array<i64: 48, 128>}, {transform_indices = @transform_3, window_bounds = array<i64: 1, 128>}]} {
    %0 = tpu.iota {dimensions = array<i32: 0>} : vector<128x128xi32>
    %c0 = arith.constant 0 : index
    %c0_0 = arith.constant 0 : index
    %1 = vector.load %arg1[%c0, %c0_0] : memref<8x128xi32, #tpu.memory_space<vmem>>, vector<8x128xi32>
    %c127_i32 = arith.constant 127 : i32
    %2 = vector.broadcast %c127_i32 : i32 to vector<128x128xi32>
    %3 = arith.cmpi eq, %0, %2 : vector<128x128xi32>
    %4 = vector.extract_strided_slice %1 {offsets = [0, 0], sizes = [1, 128], strides = [1, 1]} : vector<8x128xi32> to vector<1x128xi32>
    %5 = vector.broadcast %4 : vector<1x128xi32> to vector<128x128xi32>
    %6 = arith.cmpi eq, %0, %5 : vector<128x128xi32>
    %7 = arith.ori %3, %6 : vector<128x128xi1>
    %8 = vector.extract_strided_slice %1 {offsets = [1, 0], sizes = [1, 128], strides = [1, 1]} : vector<8x128xi32> to vector<1x128xi32>
    %9 = vector.broadcast %8 : vector<1x128xi32> to vector<128x128xi32>
    %10 = arith.cmpi eq, %0, %9 : vector<128x128xi32>
    %11 = arith.ori %7, %10 : vector<128x128xi1>
    %12 = vector.extract_strided_slice %1 {offsets = [2, 0], sizes = [1, 128], strides = [1, 1]} : vector<8x128xi32> to vector<1x128xi32>
    %13 = vector.broadcast %12 : vector<1x128xi32> to vector<128x128xi32>
    %14 = arith.cmpi eq, %0, %13 : vector<128x128xi32>
    %15 = arith.ori %11, %14 : vector<128x128xi1>
    %16 = vector.extract_strided_slice %1 {offsets = [3, 0], sizes = [1, 128], strides = [1, 1]} : vector<8x128xi32> to vector<1x128xi32>
    %17 = vector.broadcast %16 : vector<1x128xi32> to vector<128x128xi32>
    %18 = arith.cmpi eq, %0, %17 : vector<128x128xi32>
    %19 = arith.ori %15, %18 : vector<128x128xi1>
    %20 = vector.extract_strided_slice %1 {offsets = [4, 0], sizes = [1, 128], strides = [1, 1]} : vector<8x128xi32> to vector<1x128xi32>
    %21 = vector.broadcast %20 : vector<1x128xi32> to vector<128x128xi32>
    %22 = arith.cmpi eq, %0, %21 : vector<128x128xi32>
    %23 = arith.ori %19, %22 : vector<128x128xi1>
    %24 = vector.extract_strided_slice %1 {offsets = [5, 0], sizes = [1, 128], strides = [1, 1]} : vector<8x128xi32> to vector<1x128xi32>
    %25 = vector.broadcast %24 : vector<1x128xi32> to vector<128x128xi32>
    %26 = arith.cmpi eq, %0, %25 : vector<128x128xi32>
    %27 = arith.ori %23, %26 : vector<128x128xi1>
    %28 = arith.extui %27 : vector<128x128xi1> to vector<128x128xi32>
    %29 = arith.sitofp %28 : vector<128x128xi32> to vector<128x128xf32>
    %30 = arith.truncf %29 : vector<128x128xf32> to vector<128x128xbf16>
    %31 = vector.extract_strided_slice %1 {offsets = [6, 0], sizes = [1, 128], strides = [1, 1]} : vector<8x128xi32> to vector<1x128xi32>
    %32 = vector.broadcast %31 : vector<1x128xi32> to vector<128x128xi32>
    %33 = arith.cmpi eq, %0, %32 : vector<128x128xi32>
    %34 = arith.extui %33 : vector<128x128xi1> to vector<128x128xi32>
    %35 = arith.sitofp %34 : vector<128x128xi32> to vector<128x128xf32>
    %36 = arith.truncf %35 : vector<128x128xf32> to vector<128x128xbf16>
    %c0_1 = arith.constant 0 : index
    %c0_2 = arith.constant 0 : index
    %37 = vector.load %arg2[%c0_1, %c0_2] : memref<48x128xbf16, #tpu.memory_space<vmem>>, vector<48x128xbf16>
    %cst = arith.constant dense<0.000000e+00> : vector<48x128xf32>
    %38 = tpu.matmul %37, %30, %cst {dimension_numbers = #tpu.dot_dimension_numbers<[1], [0], [0], [1], [0, 0, 1, 1], [], []>} : vector<48x128xbf16>, vector<128x128xbf16>, vector<48x128xf32> -> vector<48x128xf32>
    %c0_3 = arith.constant 0 : index
    %c0_4 = arith.constant 0 : index
    %39 = vector.load %arg3[%c0_3, %c0_4] : memref<48x128xbf16, #tpu.memory_space<vmem>>, vector<48x128xbf16>
    %cst_5 = arith.constant dense<0.000000e+00> : vector<48x128xf32>
    %40 = tpu.matmul %39, %36, %cst_5 {dimension_numbers = #tpu.dot_dimension_numbers<[1], [0], [0], [1], [0, 0, 1, 1], [], []>} : vector<48x128xbf16>, vector<128x128xbf16>, vector<48x128xf32> -> vector<48x128xf32>
    %41 = arith.mulf %38, %40 : vector<48x128xf32>
    %cst_6 = arith.constant dense<0.000000e+00> : vector<128xf32>
    %42 = vector.multi_reduction <add>, %41, %cst_6 [0] : vector<48x128xf32> to vector<128xf32>
    %43 = vector.shape_cast %42 : vector<128xf32> to vector<1x128xf32>
    %c0_7 = arith.constant 0 : index
    %c0_8 = arith.constant 0 : index
    %44 = vector.load %arg4[%c0_7, %c0_8] : memref<1x128xf32, #tpu.memory_space<vmem>>, vector<1x128xf32>
    tpu.vector_store %arg4[%c0_7, %c0_8], %43 {strides = array<i32>} : memref<1x128xf32, #tpu.memory_space<vmem>>, vector<1x128xf32>,
    return
  }
  func.func @transform_0(%arg0: i32) -> (i32, i32) {
    %c0_i32 = arith.constant 0 : i32
    %c0_i32_0 = arith.constant 0 : i32
    return %c0_i32, %arg0 : i32, i32
  }
  func.func @transform_1(%arg0: i32) -> (i32, i32) {
    %c0_i32 = arith.constant 0 : i32
    %c0_i32_0 = arith.constant 0 : i32
    %c0_i32_1 = arith.constant 0 : i32
    return %c0_i32, %c0_i32_0 : i32, i32
  }
  func.func @transform_2(%arg0: i32) -> (i32, i32) {
    %c0_i32 = arith.constant 0 : i32
    %c0_i32_0 = arith.constant 0 : i32
    %c0_i32_1 = arith.constant 0 : i32
    return %c0_i32, %c0_i32_0 : i32, i32
  }
  func.func @transform_3(%arg0: i32) -> (i32, i32) {
    %c0_i32 = arith.constant 0 : i32
    %c0_i32_0 = arith.constant 0 : i32
    return %c0_i32, %arg0 : i32, i32
  }
}

</mosaic_0001>

<bundles_post_ra>
// kernel: tpu_custom_call.1
= control target key start
LH: loop header
LB: loop body
LE: loop exit
PB: predicated region body
PF: predicated region fallthrough
CT: control target
= control target key end

     0   :  { %8 = vsyncpa [#allocation3], 0  ;;  %s1124_s0 = inlined_call_operand.hbm [shape: s32[8,128], index: 0, kind: input, shape index: {}]   ;;  %s1125_s1 = inlined_call_operand.hbm [shape: bf16[48,128], index: 1, kind: input, shape index: {}]   ;;  %s1126_s2 = inlined_call_operand.hbm [shape: bf16[48,128], index: 2, kind: input, shape index: {}]   ;;  %s1127_s3 = inlined_call_operand.hbm [shape: f32[1,128], index: 3, kind: output, shape index: {}]  }
   0x1   :  { %9 = vsyncpa [#allocation6], 0  ;;  %s26_s14 = sshll.u32 %s1125_s1, 4  ;;  %s27_s14 = int_to_ptr.hbm [resolvable:$true] %s26_s14 }
   0x2   :  { %10 = vsyncpa [#allocation4], 0  ;;  %s725_s15 = smov [#allocation5]   ;;  %s16_s19 = sshll.u32 %s1124_s0, 4  ;;  %s17_s19 = int_to_ptr.hbm [resolvable:$true] %s16_s19 }
   0x3   :  { %s28_s16 = sshll.u32 %s725_s15, 4  ;;  %s726_s20 = smov 64   ;;  %s29_s16 = int_to_ptr.vmem [resolvable:$true] %s28_s16 }
   0x4   :  { %s727_s21 = smov 4   ;;  %s728_s22 = smov [#allocation2]  }
   0x5   :  { %34 = dma.hbm_to_vmem [thread:$0]  %s27_s14, 384, %s29_s16, [#allocation6], %s726_s20, %s726_s20, %s727_s21  }
   0x6   :  { %s18_s23 = sshll.u32 %s728_s22, 4  ;;  %s39_s26 = sshll.u32 %s1126_s2, 4  ;;  %s19_s23 = int_to_ptr.vmem [resolvable:$true] %s18_s23  ;;  %s40_s26 = int_to_ptr.hbm [resolvable:$true] %s39_s26 }
   0x7   :  { %21 = dma.hbm_to_vmem [thread:$0]  %s17_s19, 128, %s19_s23, [#allocation3]  }
   0x8   :  { %s729_s1 = smov [#allocation7]  }
   0x9   :  { %s41_s27 = sshll.u32 %s729_s1, 4  ;;  %s42_s27 = int_to_ptr.vmem [resolvable:$true] %s41_s27 }
   0xa   :  { %47 = dma.hbm_to_vmem [thread:$0]  %s40_s26, 384, %s42_s27, [#allocation6], %s726_s20, %s726_s20, %s727_s21  }
   0xb   :  { %719 = dma.done.wait [#allocation3], 128  }
   0xc   :  { %720 = vsyncadd [#allocation3], 4294967168 }
   0xd   :  { %721 = dma.done.wait [#allocation6], 768  }
   0xe   :  { %722 = vsyncadd [#allocation6], 4294966528  ;;  %v60_v0 = vlaneseq  ;;  %v77_v6 = vld [vmem:[#allocation2] sm:$0xff]  ;;  %v730_v12 = vmov 1.0|1.0   ;;  %v731_v18 = vmov 0.0  }
   0xf   :  { %v772_v7 = vperm.slane %v77_v6, 6  ;;  %v774_v8 = vperm.slane %v77_v6, 0  ;;  %v776_v9 = vperm.slane %v77_v6, 1  ;;  %v778_v10 = vperm.slane %v77_v6, 2  ;;  %v597_v45 = vld [vmem:[#allocation7 + $0x8] sm:$0xff]  ;;  %v596_v46 = vld [vmem:[#allocation7] sm:$0xff] }
  0x10   :  { %v762_v1 = vshrl.u32 %v60_v0, 7  ;;  %v789_v11 = vperm.slane %v77_v6, 3  ;;  %v799_v14 = vperm.slane %v77_v6, 4  ;;  %v804_v15 = vperm.slane %v77_v6, 5  ;;  %v598_v51 = vld [vmem:[#allocation7 + $0x10] sm:$0xff]  ;;  %v593_v55 = vld [vmem:[#allocation5] sm:$0xff] }
  0x11   :  { %v594_v56 = vld [vmem:[#allocation5 + $0x8] sm:$0xff]  ;;  %v595_v57 = vld [vmem:[#allocation5 + $0x10] sm:$0xff]  ;;  %s732_s0 = smov [#allocation8]   ;;  %s510_s30 = sshll.u32 %s1127_s3, 4  ;;  %s511_s30 = int_to_ptr.hbm [resolvable:$true] %s510_s30 }
  0x12   :  { %v76_v2 = vadd.s32 120, %v762_v1  ;;  %v75_v3 = vadd.s32 112, %v762_v1  ;;  %v767_v4 = vadd.s32 96, %v762_v1  ;;  %v770_v5 = vadd.s32 104, %v762_v1  ;;  %s508_s2 = sshll.u32 %s732_s0, 4  ;;  %s509_s2 = int_to_ptr.vmem [resolvable:$true] %s508_s2 }
  0x13   :  { %v812_v16 = vadd.s32 80, %v762_v1  ;;  %v815_v17 = vadd.s32 88, %v762_v1  ;;  %v850_v22 = vadd.s32 64, %v762_v1  ;;  %v853_v23 = vadd.s32 72, %v762_v1 }
  0x14   :  { %vm93_vm0 = vcmp.eq.s32.totalorder %v76_v2, 127  ;;  %vm347_vm1 = vcmp.eq.s32.totalorder %v75_v3, %v772_v7  ;;  %vm348_vm2 = vcmp.eq.s32.totalorder %v76_v2, %v772_v7  ;;  %vm345_vm3 = vcmp.eq.s32.totalorder %v767_v4, %v772_v7 }
  0x15   :  { %vm346_vm4 = vcmp.eq.s32.totalorder %v770_v5, %v772_v7  ;;  %vm577_vm5 = vmpackc.low %vm348_vm2, %vm347_vm1  ;;  %vm109_vm6 = vcmp.eq.s32.totalorder %v75_v3, %v774_v8  ;;  %vm110_vm7 = vcmp.eq.s32.totalorder %v76_v2, %v774_v8  ;;  %vm142_vm8 = vcmp.eq.s32.totalorder %v75_v3, %v776_v9 }
  0x16   :  { %607 = vmatpush.bf16.msk.msra.mxu3 %vm577_vm5, %v730_v12  ;;  %vm792_vm9 = vmpackc.low %vm346_vm4, %vm345_vm3  ;;  %vm143_vm10 = vcmp.eq.s32.totalorder %v76_v2, %v776_v9  ;;  %vm175_vm12 = vcmp.eq.s32.totalorder %v75_v3, %v778_v10  ;;  %578 = vmatpush.bf16.msk.msra.mxu1 %vm577_vm5, %v730_v12  ;;  %vm176_vm14 = vcmp.eq.s32.totalorder %v76_v2, %v778_v10  ;;  %v888_v27 = vadd.s32 48, %v762_v1 }
  0x17   :  { %vm126_vm11 = vmor %vm93_vm0, %vm110_vm7  ;;  %vm208_vm1 = vcmp.eq.s32.totalorder %v75_v3, %v789_v11  ;;  %vm209_vm0 = vcmp.eq.s32.totalorder %v76_v2, %v789_v11  ;;  %vm241_vm4 = vcmp.eq.s32.totalorder %v75_v3, %v799_v14  ;;  %v891_v28 = vadd.s32 56, %v762_v1 }
  0x18   :  { %vm158_vm13 = vmor %vm109_vm6, %vm142_vm8  ;;  %vm242_vm6 = vcmp.eq.s32.totalorder %v76_v2, %v799_v14  ;;  %vm274_vm8 = vcmp.eq.s32.totalorder %v75_v3, %v804_v15  ;;  %v916_v31 = vadd.s32 8, %v762_v1  ;;  %v933_v33 = vadd.s32 32, %v762_v1 }
  0x19   :  { %vm159_vm15 = vmor %vm126_vm11, %vm143_vm10  ;;  %vm275_vm11 = vcmp.eq.s32.totalorder %v76_v2, %v804_v15  ;;  %v936_v34 = vadd.s32 40, %v762_v1  ;;  %v992_v38 = vadd.s32 16, %v762_v1  ;;  %v995_v39 = vadd.s32 24, %v762_v1 }
  0x1a   :  { %608 = vmatpush.bf16.msk.msra.mxu3 %vm792_vm9, %v730_v12  ;;  %vm191_vm2 = vmor %vm158_vm13, %vm175_vm12  ;;  %580 = vmatpush.bf16.msk.msra.mxu1 %vm792_vm9, %v730_v12  ;;  %vm343_vm13 = vcmp.eq.s32.totalorder %v812_v16, %v772_v7  ;;  %vm107_vm9 = vcmp.eq.s32.totalorder %v767_v4, %v774_v8 }
  0x1b   :  { %vm192_vm3 = vmor %vm159_vm15, %vm176_vm14  ;;  %vm344_vm14 = vcmp.eq.s32.totalorder %v815_v17, %v772_v7 }
  0x1c   :  { %vm224_vm5 = vmor %vm191_vm2, %vm208_vm1  ;;  %vm140_vm1 = vcmp.eq.s32.totalorder %v767_v4, %v776_v9 }
  0x1d   :  { %vm225_vm7 = vmor %vm192_vm3, %vm209_vm0  ;;  %vm108_vm0 = vcmp.eq.s32.totalorder %v770_v5, %v774_v8  ;;  %vm141_vm3 = vcmp.eq.s32.totalorder %v770_v5, %v776_v9 }
  0x1e   :  { %vm257_vm10 = vmor %vm224_vm5, %vm241_vm4  ;;  %vm173_vm5 = vcmp.eq.s32.totalorder %v767_v4, %v778_v10 }
  0x1f   :  { %vm258_vm12 = vmor %vm225_vm7, %vm242_vm6  ;;  %vm174_vm7 = vcmp.eq.s32.totalorder %v770_v5, %v778_v10 }
  0x20   :  { %vm290_vm15 = vmor %vm257_vm10, %vm274_vm8  ;;  %vm206_vm10 = vcmp.eq.s32.totalorder %v767_v4, %v789_v11 }
  0x21   :  { %vm291_vm2 = vmor %vm258_vm12, %vm275_vm11  ;;  %v535_v19 = vsel %vm290_vm15, 1.0, %v731_v18  ;;  %vm207_vm12 = vcmp.eq.s32.totalorder %v770_v5, %v789_v11 }
  0x22   :  { %v536_v20 = vsel %vm291_vm2, 1.0, %v731_v18  ;;  %vm581_vm4 = vmpackc.low %vm344_vm14, %vm343_vm13  ;;  %vm239_vm14 = vcmp.eq.s32.totalorder %v767_v4, %v799_v14  ;;  %vm272_vm2 = vcmp.eq.s32.totalorder %v767_v4, %v804_v15 }
  0x23   :  { %v331_v21 = vpack.c.bf16 %v536_v20, %v535_v19  ;;  %609 = vmatpush.bf16.msk.msra.mxu3 %vm581_vm4, %v730_v12  ;;  %vm156_vm6 = vmor %vm107_vm9, %vm140_vm1  ;;  %582 = vmatpush.bf16.msk.msra.mxu1 %vm581_vm4, %v730_v12  ;;  %vm240_vm9 = vcmp.eq.s32.totalorder %v770_v5, %v799_v14 }
  0x24   :  { %vm157_vm8 = vmor %vm108_vm0, %vm141_vm3  ;;  %vm273_vm3 = vcmp.eq.s32.totalorder %v770_v5, %v804_v15 }
  0x25   :  { %413 = vmatpush.bf16.msra.mxu0 %v331_v21  ;;  %599 = vmatpush.bf16.msra.mxu2 %v331_v21  ;;  %vm189_vm11 = vmor %vm156_vm6, %vm173_vm5  ;;  %vm341_vm5 = vcmp.eq.s32.totalorder %v850_v22, %v772_v7  ;;  %vm342_vm6 = vcmp.eq.s32.totalorder %v853_v23, %v772_v7 }
  0x26   :  { %vm190_vm13 = vmor %vm157_vm8, %vm174_vm7  ;;  %vm105_vm8 = vcmp.eq.s32.totalorder %v812_v16, %v774_v8 }
  0x27   :  { %vm222_vm15 = vmor %vm189_vm11, %vm206_vm10  ;;  %vm138_vm10 = vcmp.eq.s32.totalorder %v812_v16, %v776_v9 }
  0x28   :  { %vm223_vm1 = vmor %vm190_vm13, %vm207_vm12  ;;  %vm106_vm12 = vcmp.eq.s32.totalorder %v815_v17, %v774_v8  ;;  %vm139_vm13 = vcmp.eq.s32.totalorder %v815_v17, %v776_v9 }
  0x29   :  { %vm255_vm0 = vmor %vm222_vm15, %vm239_vm14  ;;  %vm171_vm15 = vcmp.eq.s32.totalorder %v812_v16, %v778_v10 }
  0x2a   :  { %vm256_vm4 = vmor %vm223_vm1, %vm240_vm9  ;;  %vm172_vm1 = vcmp.eq.s32.totalorder %v815_v17, %v778_v10 }
  0x2b   :  { %vm288_vm7 = vmor %vm255_vm0, %vm272_vm2  ;;  %vm204_vm0 = vcmp.eq.s32.totalorder %v812_v16, %v789_v11 }
  0x2c   :  { %vm289_vm11 = vmor %vm256_vm4, %vm273_vm3  ;;  %v533_v24 = vsel %vm288_vm7, 1.0, %v731_v18  ;;  %vm205_vm4 = vcmp.eq.s32.totalorder %v815_v17, %v789_v11 }
  0x2d   :  { %v534_v25 = vsel %vm289_vm11, 1.0, %v731_v18  ;;  %vm583_vm14 = vmpackc.low %vm342_vm6, %vm341_vm5  ;;  %vm237_vm6 = vcmp.eq.s32.totalorder %v812_v16, %v799_v14  ;;  %vm270_vm11 = vcmp.eq.s32.totalorder %v812_v16, %v804_v15 }
  0x2e   :  { %v330_v26 = vpack.c.bf16 %v534_v25, %v533_v24  ;;  %610 = vmatpush.bf16.msk.msra.mxu3 %vm583_vm14, %v730_v12  ;;  %vm154_vm9 = vmor %vm105_vm8, %vm138_vm10  ;;  %584 = vmatpush.bf16.msk.msra.mxu1 %vm583_vm14, %v730_v12  ;;  %vm238_vm8 = vcmp.eq.s32.totalorder %v815_v17, %v799_v14 }
  0x2f   :  { %vm155_vm2 = vmor %vm106_vm12, %vm139_vm13  ;;  %vm271_vm13 = vcmp.eq.s32.totalorder %v815_v17, %v804_v15 }
  0x30   :  { %414 = vmatpush.bf16.msra.mxu0 %v330_v26  ;;  %600 = vmatpush.bf16.msra.mxu2 %v330_v26  ;;  %vm187_vm3 = vmor %vm154_vm9, %vm171_vm15  ;;  %vm339_vm15 = vcmp.eq.s32.totalorder %v888_v27, %v772_v7  ;;  %vm340_vm9 = vcmp.eq.s32.totalorder %v891_v28, %v772_v7 }
  0x31   :  { %vm188_vm5 = vmor %vm155_vm2, %vm172_vm1  ;;  %vm103_vm2 = vcmp.eq.s32.totalorder %v850_v22, %v774_v8 }
  0x32   :  { %vm220_vm7 = vmor %vm187_vm3, %vm204_vm0  ;;  %vm136_vm0 = vcmp.eq.s32.totalorder %v850_v22, %v776_v9 }
  0x33   :  { %vm221_vm10 = vmor %vm188_vm5, %vm205_vm4  ;;  %vm104_vm4 = vcmp.eq.s32.totalorder %v853_v23, %v774_v8  ;;  %vm137_vm5 = vcmp.eq.s32.totalorder %v853_v23, %v776_v9 }
  0x34   :  { %vm253_vm12 = vmor %vm220_vm7, %vm237_vm6  ;;  %vm169_vm7 = vcmp.eq.s32.totalorder %v850_v22, %v778_v10 }
  0x35   :  { %vm254_vm14 = vmor %vm221_vm10, %vm238_vm8  ;;  %vm170_vm10 = vcmp.eq.s32.totalorder %v853_v23, %v778_v10 }
  0x36   :  { %vm286_vm1 = vmor %vm253_vm12, %vm270_vm11  ;;  %vm202_vm12 = vcmp.eq.s32.totalorder %v850_v22, %v789_v11 }
  0x37   :  { %vm287_vm3 = vmor %vm254_vm14, %vm271_vm13  ;;  %v531_v29 = vsel %vm286_vm1, 1.0, %v731_v18  ;;  %vm333_vm13 = vcmp.eq.s32.totalorder %v762_v1, %v772_v7 }
  0x38   :  { %v532_v30 = vsel %vm287_vm3, 1.0, %v731_v18  ;;  %vm585_vm6 = vmpackc.low %vm340_vm9, %vm339_vm15  ;;  %vm203_vm9 = vcmp.eq.s32.totalorder %v853_v23, %v789_v11  ;;  %vm236_vm3 = vcmp.eq.s32.totalorder %v853_v23, %v799_v14 }
  0x39   :  { %v329_v32 = vpack.c.bf16 %v532_v30, %v531_v29  ;;  %611 = vmatpush.bf16.msk.msra.mxu3 %vm585_vm6, %v730_v12  ;;  %vm152_vm8 = vmor %vm103_vm2, %vm136_vm0  ;;  %586 = vmatpush.bf16.msk.msra.mxu1 %vm585_vm6, %v730_v12  ;;  %vm235_vm2 = vcmp.eq.s32.totalorder %v850_v22, %v799_v14 }
  0x3a   :  { %vm153_vm11 = vmor %vm104_vm4, %vm137_vm5  ;;  %vm268_vm5 = vcmp.eq.s32.totalorder %v850_v22, %v804_v15 }
  0x3b   :  { %415 = vmatpush.bf16.msra.mxu0 %v329_v32  ;;  %601 = vmatpush.bf16.msra.mxu2 %v329_v32  ;;  %vm185_vm15 = vmor %vm152_vm8, %vm169_vm7  ;;  %vm269_vm7 = vcmp.eq.s32.totalorder %v853_v23, %v804_v15 }
  0x3c   :  { %vm186_vm1 = vmor %vm153_vm11, %vm170_vm10  ;;  %vm337_vm10 = vcmp.eq.s32.totalorder %v933_v33, %v772_v7  ;;  %vm338_vm11 = vcmp.eq.s32.totalorder %v936_v34, %v772_v7 }
  0x3d   :  { %vm218_vm0 = vmor %vm185_vm15, %vm202_vm12  ;;  %vm101_vm12 = vcmp.eq.s32.totalorder %v888_v27, %v774_v8  ;;  %vm102_vm15 = vcmp.eq.s32.totalorder %v891_v28, %v774_v8 }
  0x3e   :  { %vm219_vm4 = vmor %vm186_vm1, %vm203_vm9  ;;  %vm134_vm9 = vcmp.eq.s32.totalorder %v888_v27, %v776_v9  ;;  %vm135_vm1 = vcmp.eq.s32.totalorder %v891_v28, %v776_v9 }
  0x3f   :  { %vm251_vm6 = vmor %vm218_vm0, %vm235_vm2 }
  0x40   :  { %vm252_vm8 = vmor %vm219_vm4, %vm236_vm3  ;;  %vm233_vm3 = vcmp.eq.s32.totalorder %v888_v27, %v799_v14 }
  0x41   :  { %vm284_vm14 = vmor %vm251_vm6, %vm268_vm5  ;;  %vm167_vm6 = vcmp.eq.s32.totalorder %v888_v27, %v778_v10 }
  0x42   :  { %vm285_vm2 = vmor %vm252_vm8, %vm269_vm7  ;;  %v529_v35 = vsel %vm284_vm14, 1.0, %v731_v18  ;;  %vm168_vm8 = vcmp.eq.s32.totalorder %v891_v28, %v778_v10 }
  0x43   :  { %v530_v36 = vsel %vm285_vm2, 1.0, %v731_v18  ;;  %vm587_vm5 = vmpackc.low %vm338_vm11, %vm337_vm10  ;;  %vm200_vm11 = vcmp.eq.s32.totalorder %v888_v27, %v789_v11  ;;  %vm133_vm2 = vcmp.eq.s32.totalorder %v936_v34, %v776_v9 }
  0x44   :  { %v328_v37 = vpack.c.bf16 %v530_v36, %v529_v35  ;;  %612 = vmatpush.bf16.msk.msra.mxu3 %vm587_vm5, %v730_v12  ;;  %vm150_vm14 = vmor %vm101_vm12, %vm134_vm9  ;;  %588 = vmatpush.bf16.msk.msra.mxu1 %vm587_vm5, %v730_v12  ;;  %vm201_vm5 = vcmp.eq.s32.totalorder %v891_v28, %v789_v11 }
  0x45   :  { %vm151_vm10 = vmor %vm102_vm15, %vm135_vm1  ;;  %vm267_vm15 = vcmp.eq.s32.totalorder %v891_v28, %v804_v15 }
  0x46   :  { %416 = vmatpush.bf16.msra.mxu0 %v328_v37  ;;  %602 = vmatpush.bf16.msra.mxu2 %v328_v37  ;;  %vm183_vm9 = vmor %vm150_vm14, %vm167_vm6  ;;  %vm234_vm14 = vcmp.eq.s32.totalorder %v891_v28, %v799_v14 }
  0x47   :  { %vm184_vm7 = vmor %vm151_vm10, %vm168_vm8  ;;  %vm266_vm8 = vcmp.eq.s32.totalorder %v888_v27, %v804_v15 }
  0x48   :  { %vm216_vm6 = vmor %vm183_vm9, %vm200_vm11  ;;  %vm335_vm11 = vcmp.eq.s32.totalorder %v992_v38, %v772_v7 }
  0x49   :  { %vm217_vm12 = vmor %vm184_vm7, %vm201_vm5  ;;  %vm336_vm7 = vcmp.eq.s32.totalorder %v995_v39, %v772_v7  ;;  %vm231_vm5 = vcmp.eq.s32.totalorder %v933_v33, %v799_v14 }
  0x4a   :  { %vm249_vm0 = vmor %vm216_vm6, %vm233_vm3  ;;  %vm99_vm3 = vcmp.eq.s32.totalorder %v933_v33, %v774_v8  ;;  %vm132_vm6 = vcmp.eq.s32.totalorder %v933_v33, %v776_v9 }
  0x4b   :  { %vm250_vm4 = vmor %vm217_vm12, %vm234_vm14  ;;  %vm100_vm14 = vcmp.eq.s32.totalorder %v936_v34, %v774_v8 }
  0x4c   :  { %vm282_vm10 = vmor %vm249_vm0, %vm266_vm8  ;;  %vm165_vm0 = vcmp.eq.s32.totalorder %v933_v33, %v778_v10 }
  0x4d   :  { %vm283_vm12 = vmor %vm250_vm4, %vm267_vm15  ;;  %v527_v40 = vsel %vm282_vm10, 1.0, %v731_v18  ;;  %vm166_vm4 = vcmp.eq.s32.totalorder %v936_v34, %v778_v10  ;;  %vm198_vm10 = vcmp.eq.s32.totalorder %v933_v33, %v789_v11 }
  0x4e   :  { %v528_v41 = vsel %vm283_vm12, 1.0, %v731_v18  ;;  %vm589_vm9 = vmpackc.low %vm336_vm7, %vm335_vm11  ;;  %vm199_vm11 = vcmp.eq.s32.totalorder %v936_v34, %v789_v11 }
  0x4f   :  { %v327_v42 = vpack.c.bf16 %v528_v41, %v527_v40  ;;  %613 = vmatpush.bf16.msk.msra.mxu3 %vm589_vm9, %v730_v12  ;;  %vm148_vm8 = vmor %vm99_vm3, %vm132_vm6  ;;  %590 = vmatpush.bf16.msk.msra.mxu1 %vm589_vm9, %v730_v12  ;;  %vm232_vm6 = vcmp.eq.s32.totalorder %v936_v34, %v799_v14 }
  0x50   :  { %vm149_vm15 = vmor %vm100_vm14, %vm133_vm2  ;;  %vm264_vm2 = vcmp.eq.s32.totalorder %v933_v33, %v804_v15  ;;  %vm265_vm14 = vcmp.eq.s32.totalorder %v936_v34, %v804_v15 }
  0x51   :  { %417 = vmatpush.bf16.msra.mxu0 %v327_v42  ;;  %603 = vmatpush.bf16.msra.mxu2 %v327_v42  ;;  %vm181_vm12 = vmor %vm148_vm8, %vm165_vm0 }
  0x52   :  { %vm182_vm7 = vmor %vm149_vm15, %vm166_vm4  ;;  %vm97_vm4 = vcmp.eq.s32.totalorder %v992_v38, %v774_v8  ;;  %vm130_vm15 = vcmp.eq.s32.totalorder %v992_v38, %v776_v9 }
  0x53   :  { %vm214_vm3 = vmor %vm181_vm12, %vm198_vm10  ;;  %vm98_vm12 = vcmp.eq.s32.totalorder %v995_v39, %v774_v8 }
  0x54   :  { %vm215_vm1 = vmor %vm182_vm7, %vm199_vm11  ;;  %vm163_vm7 = vcmp.eq.s32.totalorder %v992_v38, %v778_v10 }
  0x55   :  { %vm247_vm9 = vmor %vm214_vm3, %vm231_vm5  ;;  %vm131_vm5 = vcmp.eq.s32.totalorder %v995_v39, %v776_v9 }
  0x56   :  { %vm248_vm0 = vmor %vm215_vm1, %vm232_vm6  ;;  %vm1130_vm1 = vcmp.eq.s32.totalorder %v916_v31, %v772_v7  ;;  %vm164_vm6 = vcmp.eq.s32.totalorder %v995_v39, %v778_v10 }
  0x57   :  { %vm280_vm8 = vmor %vm247_vm9, %vm264_vm2  ;;  %vm196_vm9 = vcmp.eq.s32.totalorder %v992_v38, %v789_v11 }
  0x58   :  { %vm281_vm10 = vmor %vm248_vm0, %vm265_vm14  ;;  %v525_v43 = vsel %vm280_vm8, 1.0, %v731_v18  ;;  %vm197_vm14 = vcmp.eq.s32.totalorder %v995_v39, %v789_v11  ;;  %vm229_vm8 = vcmp.eq.s32.totalorder %v992_v38, %v799_v14 }
  0x59   :  { %v526_v44 = vsel %vm281_vm10, 1.0, %v731_v18  ;;  %vm591_vm11 = vmpackc.low %vm1130_vm1, %vm333_vm13  ;;  %vm263_vm1 = vcmp.eq.s32.totalorder %v995_v39, %v804_v15 }
  0x5a   :  { %v326_v47 = vpack.c.bf16 %v526_v44, %v525_v43  ;;  %614 = vmatpush.bf16.msk.msra.mxu3 %vm591_vm11, %v730_v12  ;;  %vm146_vm3 = vmor %vm97_vm4, %vm130_vm15  ;;  %592 = vmatpush.bf16.msk.msra.mxu1 %vm591_vm11, %v730_v12  ;;  %vm230_vm15 = vcmp.eq.s32.totalorder %v995_v39, %v799_v14 }
  0x5b   :  { %vm147_vm2 = vmor %vm98_vm12, %vm131_vm5  ;;  %vm262_vm12 = vcmp.eq.s32.totalorder %v992_v38, %v804_v15 }
  0x5c   :  { %418 = vmatpush.bf16.msra.mxu0 %v326_v47  ;;  %604 = vmatpush.bf16.msra.mxu2 %v326_v47  ;;  %vm179_vm13 = vmor %vm146_vm3, %vm163_vm7 }
  0x5d   :  { %474 = vmatmul.bf16.vlgmr.msra.gmra.mxu3 %v597_v45  ;;  %vm180_vm0 = vmor %vm147_vm2, %vm164_vm6  ;;  %469 = vmatmul.bf16.vlgmr.msra.gmra.mxu1 %v596_v46  ;;  %vm1131_vm6 = vcmp.eq.s32.totalorder %v762_v1, %v776_v9  ;;  %vm1132_vm2 = vcmp.eq.s32.totalorder %v762_v1, %v774_v8 }
  0x5e   :  { %vm212_vm4 = vmor %vm179_vm13, %vm196_vm9  ;;  %vm1133_vm13 = vcmp.eq.s32.totalorder %v916_v31, %v776_v9 }
  0x5f   :  { %vm213_vm10 = vmor %vm180_vm0, %vm197_vm14  ;;  %vm1134_vm14 = vcmp.eq.s32.totalorder %v916_v31, %v774_v8 }
  0x60   :  { %vm245_vm5 = vmor %vm212_vm4, %vm229_vm8  ;;  %vm1135_vm8 = vcmp.eq.s32.totalorder %v762_v1, %v778_v10 }
  0x61   :  { %vm246_vm11 = vmor %vm213_vm10, %vm230_vm15  ;;  %vm1136_vm15 = vcmp.eq.s32.totalorder %v916_v31, %v778_v10 }
  0x62   :  { %vm278_vm7 = vmor %vm245_vm5, %vm262_vm12  ;;  %vm1137_vm12 = vcmp.eq.s32.totalorder %v762_v1, %v789_v11 }
  0x63   :  { %vm279_vm3 = vmor %vm246_vm11, %vm263_vm1  ;;  %v523_v48 = vsel %vm278_vm7, 1.0, %v731_v18  ;;  %vm1138_vm1 = vcmp.eq.s32.totalorder %v916_v31, %v789_v11  ;;  %vm1139_vm7 = vcmp.eq.s32.totalorder %v762_v1, %v799_v14 }
  0x64   :  { %v524_v49 = vsel %vm279_vm3, 1.0, %v731_v18  ;;  %vm144_vm9 = vmor %vm1132_vm2, %vm1131_vm6  ;;  %vm1140_vm6 = vcmp.eq.s32.totalorder %v916_v31, %v799_v14 }
  0x65   :  { %v325_v50 = vpack.c.bf16 %v524_v49, %v523_v48  ;;  %vm145_vm0 = vmor %vm1134_vm14, %vm1133_vm13  ;;  %vm1142_vm14 = vcmp.eq.s32.totalorder %v916_v31, %v804_v15 }
  0x66   :  { %vm177_vm4 = vmor %vm144_vm9, %vm1135_vm8  ;;  %vm1141_vm9 = vcmp.eq.s32.totalorder %v762_v1, %v804_v15 }
  0x67   :  { %419 = vmatpush.bf16.msra.mxu0 %v325_v50  ;;  %605 = vmatpush.bf16.msra.mxu2 %v325_v50  ;;  %vm178_vm10 = vmor %vm145_vm0, %vm1136_vm15 }
  0x68   :  { %vm210_vm5 = vmor %vm177_vm4, %vm1137_vm12 }
  0x69   :  { %vm211_vm11 = vmor %vm178_vm10, %vm1138_vm1 }
  0x6a   :  { %vm243_vm3 = vmor %vm210_vm5, %vm1139_vm7 }
  0x6b   :  { %vm244_vm2 = vmor %vm211_vm11, %vm1140_vm6 }
  0x6c   :  { %vm276_vm13 = vmor %vm243_vm3, %vm1141_vm9 }
  0x6d   :  { %vm277_vm0 = vmor %vm244_vm2, %vm1142_vm14  ;;  %v521_v52 = vsel %vm276_vm13, 1.0, %v731_v18  ;;  %479 = vmatmul.bf16.gmra.mxu3 %v598_v51 }
  0x6e   :  { %v522_v53 = vsel %vm277_vm0, 1.0, %v731_v18 }
  0x6f   :  { %v324_v54 = vpack.c.bf16 %v522_v53, %v521_v52 }
  0x71   :  { %420 = vmatpush.bf16.msra.mxu0 %v324_v54  ;;  %606 = vmatpush.bf16.msra.mxu2 %v324_v54 }
  0x74   :  { %421 = vmatmul.bf16.vlgmr.msra.gmra.mxu0 %v593_v55  ;;  %426 = vmatmul.bf16.vlgmr.msra.gmra.mxu2 %v594_v56 }
  0x84   :  { %431 = vmatmul.bf16.gmra.mxu2 %v595_v57 }
  0xda   :  { %v470_v59 = vpop.f32.mrf.mxu1 }
  0xe0   :  { %v475_v58 = vpop.f32.mrf.mxu3 }
  0xe2   :  { %v472_v1 = vpop.f32.mrf.mxu1 }
  0xe8   :  { %v477_v62 = vpop.f32.mrf.mxu3 }
  0xf0   :  { %v480_v4 = vpop.f32.mrf.mxu3 }
  0xf1   :  { %v422_v60 = vpop.f32.mrf.mxu0 }
  0xf2   :  { %v485_v2 = vmul.f32 %v470_v59, %v422_v60 }
  0xf7   :  { %v427_v61 = vpop.f32.mrf.mxu2 }
  0xf8   :  { %v487_v7 = vmul.f32 %v475_v58, %v427_v61  ;;  %v482_v12 = vpop.f32.mrf.mxu3 }
  0xf9   :  { %v424_v0 = vpop.f32.mrf.mxu0 }
  0xfa   :  { %v486_v3 = vmul.f32 %v472_v1, %v424_v0 }
  0xfc   :  { %v491_v6 = vadd.f32 %v486_v3, %v485_v2 }
  0xfe   :  { %v492_v9 = vadd.f32 %v491_v6, %v487_v7 }
  0xff   :  { %v429_v63 = vpop.f32.mrf.mxu2 }
 0x100   :  { %v488_v8 = vmul.f32 %v477_v62, %v429_v63 }
 0x102   :  { %v493_v11 = vadd.f32 %v492_v9, %v488_v8 }
 0x107   :  { %v432_v5 = vpop.f32.mrf.mxu2 }
 0x108   :  { %v489_v10 = vmul.f32 %v480_v4, %v432_v5 }
 0x10a   :  { %v494_v14 = vadd.f32 %v493_v11, %v489_v10 }
 0x10f   :  { %v434_v13 = vpop.f32.mrf.mxu2 }
 0x110   :  { %v490_v15 = vmul.f32 %v482_v12, %v434_v13 }
 0x112   :  { %v495_v16 = vadd.f32 %v494_v14, %v490_v15 }
 0x114   :  { %v496_v17 = vrot.slane %v495_v16, 4 }
 0x116   :  { %v497_v18 = vadd.f32 %v496_v17, %v495_v16 }
 0x118   :  { %v498_v19 = vrot.slane %v497_v18, 2 }
 0x11a   :  { %v499_v20 = vadd.f32 %v498_v19, %v497_v18 }
 0x11c   :  { %v500_v21 = vrot.slane %v499_v20, 1 }
 0x11e   :  { %v501_v22 = vadd.f32 %v500_v21, %v499_v20 }
 0x120   :  { %502 = vst [vmem:[#allocation8] sm:$0x1] %v501_v22 }
 0x121   :  { %513 = dma.vmem_to_hbm [thread:$0]  %s509_s2, 16, %s511_s30, [#allocation4]  }
 0x122   :  { %723 = dma.done.wait [#allocation4], 16  }
 0x123   :  { %724 = vsyncadd [#allocation4], 4294967280 }
 0x124   :  { %518 = vsyncpa [#allocation3], 1 }
 0x125   :  { %519 = vsyncpa [#allocation6], 1 }
 0x126   :  { %520 = vsyncpa [#allocation4], 1 }

</bundles_post_ra>
